<compile_context>
chip_gen: v7x
topology: tpu7x:2x2x1
jax: 0.10.0
libtpu: 0.0.40
codegen_flags: <defaults>
</compile_context>

<pallas_src>
import functools

import jax
import jax.numpy as jnp
from jax.experimental import pallas as pl
from jax.experimental.pallas import tpu as pltpu

LANE = 128
MAX_TILE_ROWS = 4096   # 2 inputs x 2 bufs x 4096*128*4B = 8 MiB < v5e's 16 MiB scoped VMEM
MIN_KERNEL_ROWS = 8    # below one sublane tile of rows, plain JAX is cheaper


def _num_core_splits():
    """2 on chips exposing two TensorCores to one kernel (v7x), else 1."""
    try:
        kind = (jax.devices()[0].device_kind or "").lower()
    except Exception:
        return 1
    return 2 if "v7" in kind else 1


def _sharp_loss_kernel(true_ref, pred_ref, out_ref, *,
                       rows, tile_rows, blocks_per_split, blocks_total,
                       needs_mask):
    c = pl.program_id(0)   # TensorCore-split axis
    i = pl.program_id(1)   # sequential reduction axis

    @pl.when(i == 0)
    def _init():
        out_ref[...] = jnp.zeros_like(out_ref)

    # Load in native dtype, cast to f32 in-register.
    t = true_ref[...].astype(jnp.float32)
    p = pred_ref[...].astype(jnp.float32)

    # sigmoid(100*(t-0.03)) == 0.5*(tanh(50*t - 1.5) + 1); tanh runs on the
    # EUP slot and the global 0.5 is applied once on the final scalar in the
    # wrapper, so this is 6 VALU ops + 1 EUP op per element.
    val = (jnp.tanh(t * 50.0 - 1.5) + 1.0) * (t - p) ** 2

    def _reduce_into_out(v):
        # (tile_rows,128) -> (tile_rows//8, 8, 128) is (8,128)-tile aligned,
        # so the reshape is layout-free and the sum is a plain vreg add chain
        # into the resident (8,128) output block; the final cross-lane reduce
        # to a scalar is deferred to the tiny wrapper-side jnp.sum.
        out_ref[...] += jnp.sum(v.reshape(tile_rows // 8, 8, LANE), axis=0)

    if needs_mask:
        # The DMA index (index_map) is clamped to blocks_total-1, while the
        # mask below uses the UNCLAMPED logical block index: a clamped
        # duplicate block therefore masks to all-zeros (no double counting),
        # and the real last block masks only its rows past `rows`.
        logical_block = c * blocks_per_split + i
        is_edge = logical_block >= blocks_total - 1

        @pl.when(is_edge)
        def _edge():
            row0 = logical_block * tile_rows
            row_ids = row0 + jax.lax.broadcasted_iota(
                jnp.int32, (tile_rows, 1), 0)
            # True select (NOT multiply-by-mask): out-of-range rows may hold
            # garbage (Inf/NaN) and 0*Inf would leak NaN.
            _reduce_into_out(jnp.where(row_ids < rows, val, 0.0))

        @pl.when(jnp.logical_not(is_edge))
        def _interior():
            _reduce_into_out(val)
    else:
        _reduce_into_out(val)


@functools.partial(jax.jit, static_argnames=("tile_rows",))
def sharp_loss(true, pred, *, tile_rows=MAX_TILE_ROWS):
    """sum(sigmoid(100*(t-0.03)) * (t-p)**2) / n, Pallas-accelerated.

    Inputs stream in their native dtype: keep bf16 callers bf16 end-to-end
    (HBM bytes are the hard floor on v5e/v6e); do not upcast in the wrapper.
    """
    t = true.reshape(-1)
    p = pred.reshape(-1)
    n = t.shape[0]

    rows = n // LANE
    n_main = rows * LANE if rows >= MIN_KERNEL_ROWS else 0

    # ---- main, 128-divisible part: Pallas kernel --------------------------
    if n_main > 0:
        rows_main = n_main // LANE
        # tile_rows: multiple of 8, capped for v5e's 16 MiB scoped-VMEM
        # default (pass vmem_limit_bytes via CompilerParams to go past 4096).
        tr = max(8, (int(tile_rows) // 8) * 8)
        tr = min(tr, MAX_TILE_ROWS, ((rows_main + 7) // 8) * 8)

        blocks_total = pl.cdiv(rows_main, tr)
        nsplit = _num_core_splits()
        if blocks_total < nsplit:
            nsplit = 1
        bpc = pl.cdiv(blocks_total, nsplit)   # blocks per core split

        # Mask only matters for the (possibly partial) last block and for the
        # clamped duplicate block when the split is uneven -- decided here at
        # trace time so the common even case pays zero mask cost.
        needs_mask = (rows_main % tr != 0) or (nsplit * bpc != blocks_total)

        # Free bitcast-reshape when n % 128 == 0; a real copy only in the
        # ragged case (see TODO at top of file).
        t2 = t[:n_main].reshape(rows_main, LANE)
        p2 = p[:n_main].reshape(rows_main, LANE)

        def in_index_map(c, i):
            # Clamp so a duplicate block never DMAs fully out of bounds; the
            # in-kernel mask (using the UNCLAMPED index) zeroes it.
            return (jnp.minimum(c * bpc + i, blocks_total - 1), 0)

        kernel = functools.partial(
            _sharp_loss_kernel, rows=rows_main, tile_rows=tr,
            blocks_per_split=bpc, blocks_total=blocks_total,
            needs_mask=needs_mask)

        if nsplit > 1:
            # Guarantee the split really lands on both v7x TensorCores.
            core_parallel = getattr(pltpu, "CORE_PARALLEL", pltpu.PARALLEL)
            dims = (core_parallel, pltpu.ARBITRARY)
        else:
            dims = (pltpu.ARBITRARY, pltpu.ARBITRARY)

        partials = pl.pallas_call(
            kernel,
            out_shape=jax.ShapeDtypeStruct((nsplit * 8, LANE), jnp.float32),
            grid_spec=pltpu.PrefetchScalarGridSpec(
                num_scalar_prefetch=0,
                grid=(nsplit, bpc),
                in_specs=[
                    pl.BlockSpec((tr, LANE), in_index_map),
                    pl.BlockSpec((tr, LANE), in_index_map),
                ],
                out_specs=pl.BlockSpec((8, LANE), lambda c, i: (c, 0)),
            ),
            compiler_params=pltpu.CompilerParams(
                dimension_semantics=dims),
        )(t2, p2)

        main_sum = jnp.sum(partials)   # tiny (nsplit*8, 128) reduce in XLA
    else:
        main_sum = jnp.float32(0.0)

    # ---- sub-128 tail (or tiny inputs): plain JAX, same un-halved formula -
    n_tail = n - n_main
    if n_tail > 0:
        tt = t[n_main:].astype(jnp.float32)
        pt = p[n_main:].astype(jnp.float32)
        tail_sum = jnp.sum((jnp.tanh(tt * 50.0 - 1.5) + 1.0) * (tt - pt) ** 2)
    else:
        tail_sum = jnp.float32(0.0)

    # The 0.5 from sigmoid == 0.5*(tanh+1) is applied exactly once here.
    return 0.5 * (main_sum + tail_sum) / jnp.float32(n)


def _sharp_loss_ref(true, pred):
    t = true.reshape(-1).astype(jnp.float32)
    p = pred.reshape(-1).astype(jnp.float32)
    factor = 1.0 / (1.0 + jnp.exp(-(t - 0.03) * 100.0))
    dif = (t - p) ** 2
    return jnp.sum(factor * dif) / t.shape[0]


if __name__ == "__main__":
    key = jax.random.PRNGKey(0)
    k1, k2 = jax.random.split(key)
    # NCHW-shaped inputs (flattened inside), batch=2, channels=4, spatial=16
    true = jax.random.uniform(k1, (2, 4, 16, 16), dtype=jnp.float32)
    pred = jax.random.uniform(k2, (2, 4, 16, 16), dtype=jnp.float32)

    out = sharp_loss(true, pred)
    out = jax.block_until_ready(out)

    ref = _sharp_loss_ref(true, pred)
    assert jnp.allclose(out, ref, rtol=5e-5, atol=1e-6), (out, ref)
    print("KERNEL_OK")
</pallas_src>

<mosaic_0001>
module attributes {stable_mosaic.version = 11 : i64} {
  func.func @_sharp_loss_kernel(%arg0: i32, %arg1: i32, %arg2: memref<16x128xf32, #tpu.memory_space<vmem>>, %arg3: memref<16x128xf32, #tpu.memory_space<vmem>>, %arg4: memref<8x128xf32, #tpu.memory_space<vmem>>) attributes {dimension_semantics = [#tpu.dimension_semantics<arbitrary>, #tpu.dimension_semantics<arbitrary>], iteration_bounds = array<i64: 1, 1>, scalar_prefetch = 0 : i64, scratch_operands = 0 : i64, tpu.core_type = #tpu.core_type<tc>, window_params = [{transform_indices = @transform_0, window_bounds = array<i64: 16, 128>}, {transform_indices = @transform_1, window_bounds = array<i64: 16, 128>}, {transform_indices = @transform_2, window_bounds = array<i64: 8, 128>}]} {
    %c0_i32 = arith.constant 0 : i32
    %0 = arith.cmpi eq, %arg1, %c0_i32 : i32
    %1 = arith.extui %0 : i1 to i32
    %c0_i32_0 = arith.constant 0 : i32
    %2 = arith.cmpi ne, %1, %c0_i32_0 : i32
    scf.if %2 {
      %cst_11 = arith.constant 0.000000e+00 : f32
      %20 = vector.broadcast %cst_11 : f32 to vector<8x128xf32>
      %c0_12 = arith.constant 0 : index
      %c0_13 = arith.constant 0 : index
      %21 = vector.load %arg4[%c0_12, %c0_13] : memref<8x128xf32, #tpu.memory_space<vmem>>, vector<8x128xf32>
      tpu.vector_store %arg4[%c0_12, %c0_13], %20 {strides = array<i32>} : memref<8x128xf32, #tpu.memory_space<vmem>>, vector<8x128xf32>,
    } else {
    }
    %c0 = arith.constant 0 : index
    %c0_1 = arith.constant 0 : index
    %3 = vector.load %arg2[%c0, %c0_1] : memref<16x128xf32, #tpu.memory_space<vmem>>, vector<16x128xf32>
    %c0_2 = arith.constant 0 : index
    %c0_3 = arith.constant 0 : index
    %4 = vector.load %arg3[%c0_2, %c0_3] : memref<16x128xf32, #tpu.memory_space<vmem>>, vector<16x128xf32>
    %cst = arith.constant 5.000000e+01 : f32
    %5 = vector.broadcast %cst : f32 to vector<16x128xf32>
    %6 = arith.mulf %3, %5 : vector<16x128xf32>
    %cst_4 = arith.constant 1.500000e+00 : f32
    %7 = vector.broadcast %cst_4 : f32 to vector<16x128xf32>
    %8 = arith.subf %6, %7 : vector<16x128xf32>
    %9 = math.tanh %8 : vector<16x128xf32>
    %cst_5 = arith.constant 1.000000e+00 : f32
    %10 = vector.broadcast %cst_5 : f32 to vector<16x128xf32>
    %11 = arith.addf %9, %10 : vector<16x128xf32>
    %12 = arith.subf %3, %4 : vector<16x128xf32>
    %13 = arith.mulf %12, %12 : vector<16x128xf32>
    %14 = arith.mulf %11, %13 : vector<16x128xf32>
    %c0_6 = arith.constant 0 : index
    %c0_7 = arith.constant 0 : index
    %15 = vector.load %arg4[%c0_6, %c0_7] : memref<8x128xf32, #tpu.memory_space<vmem>>, vector<8x128xf32>
    %16 = vector.shape_cast %14 : vector<16x128xf32> to vector<2x8x128xf32>
    %cst_8 = arith.constant dense<0.000000e+00> : vector<8x128xf32>
    %17 = vector.multi_reduction <add>, %16, %cst_8 [0] : vector<2x8x128xf32> to vector<8x128xf32>
    %18 = arith.addf %15, %17 : vector<8x128xf32>
    %c0_9 = arith.constant 0 : index
    %c0_10 = arith.constant 0 : index
    %19 = vector.load %arg4[%c0_9, %c0_10] : memref<8x128xf32, #tpu.memory_space<vmem>>, vector<8x128xf32>
    tpu.vector_store %arg4[%c0_9, %c0_10], %18 {strides = array<i32>} : memref<8x128xf32, #tpu.memory_space<vmem>>, vector<8x128xf32>,
    return
  }
  func.func @transform_0(%arg0: i32, %arg1: i32) -> (i32, i32) {
    %c1_i32 = arith.constant 1 : i32
    %0 = arith.muli %arg0, %c1_i32 : i32
    %1 = arith.addi %0, %arg1 : i32
    %c0_i32 = arith.constant 0 : i32
    %2 = arith.minsi %1, %c0_i32 : i32
    %c0_i32_0 = arith.constant 0 : i32
    %c0_i32_1 = arith.constant 0 : i32
    return %2, %c0_i32_0 : i32, i32
  }
  func.func @transform_1(%arg0: i32, %arg1: i32) -> (i32, i32) {
    %c1_i32 = arith.constant 1 : i32
    %0 = arith.muli %arg0, %c1_i32 : i32
    %1 = arith.addi %0, %arg1 : i32
    %c0_i32 = arith.constant 0 : i32
    %2 = arith.minsi %1, %c0_i32 : i32
    %c0_i32_0 = arith.constant 0 : i32
    %c0_i32_1 = arith.constant 0 : i32
    return %2, %c0_i32_0 : i32, i32
  }
  func.func @transform_2(%arg0: i32, %arg1: i32) -> (i32, i32) {
    %c0_i32 = arith.constant 0 : i32
    %c0_i32_0 = arith.constant 0 : i32
    return %arg0, %c0_i32 : i32, i32
  }
}

</mosaic_0001>

<bundles_post_ra>
// kernel: sharp_loss.1
= control target key start
LH: loop header
LB: loop body
LE: loop exit
PB: predicated region body
PF: predicated region fallthrough
CT: control target
= control target key end

     0   :  { %s155_s0 = inlined_call_operand.vmem [shape: f32[16,128], index: 0, kind: input, shape index: {}]   ;;  %s156_s1 = inlined_call_operand.vmem [shape: f32[16,128], index: 1, kind: input, shape index: {}]   ;;  %s157_s2 = inlined_call_operand.vmem [shape: f32[8,128], index: 2, kind: output, shape index: {}]  }
   0x1   :  { %v80_v0 = vld [vmem:[%s155_s0] sm:$0xff]  ;;  %v81_v1 = vld [vmem:[%s155_s0 + $0x8] sm:$0xff] }
   0x2   :  { %v84_v2 = vmul.f32 50.0, %v80_v0  ;;  %v85_v3 = vmul.f32 50.0, %v81_v1  ;;  %v82_v6 = vld [vmem:[%s156_s1] sm:$0xff]  ;;  %v83_v7 = vld [vmem:[%s156_s1 + $0x8] sm:$0xff] }
   0x3   :  { %v92_v8 = vsub.f32 %v80_v0, %v82_v6  ;;  %v93_v9 = vsub.f32 %v81_v1, %v83_v7 }
   0x4   :  { %v118_v4 = vadd.f32 -1.5, %v84_v2  ;;  %v119_v5 = vadd.f32 -1.5, %v85_v3 }
   0x5   :  { %v94_v10 = vmul.f32 %v92_v8, %v92_v8  ;;  %v95_v12 = vmul.f32 %v93_v9, %v93_v9 }
   0x6   :  { %121 = vtanh.f32 %v118_v4 }
   0x7   :  { %123 = vtanh.f32 %v119_v5 }
  0x10   :  { %v122_v11 = vpop.eup %121 }
  0x11   :  { %v124_v13 = vpop.eup %123  ;;  %v90_v14 = vadd.f32 1.0, %v122_v11 }
  0x12   :  { %v91_v15 = vadd.f32 1.0, %v124_v13 }
  0x13   :  { %v96_v16 = vmul.f32 %v94_v10, %v90_v14 }
  0x14   :  { %v97_v17 = vmul.f32 %v95_v12, %v91_v15 }
  0x16   :  { %v99_v18 = vadd.f32 %v97_v17, %v96_v16 }
  0x18   :  { %101 = vst [vmem:[%s157_s2] sm:$0xff] %v99_v18 }

</bundles_post_ra>
